<compile_context>
chip_gen: v7x
topology: tpu7x:2x2x1
jax: 0.10.0
libtpu: 0.0.40
codegen_flags: <defaults>
</compile_context>

<pallas_src>
import jax
import jax.numpy as jnp
from jax import lax
from jax.experimental import pallas as pl
from jax.experimental.pallas import tpu as pltpu


def _cdiv(a, b):
    return (a + b - 1) // b


def _round_up(x, m):
    return _cdiv(x, m) * m


def _vmem_budget():
    """Return (per-half logit block byte cap, vmem_limit_bytes), generation aware."""
    cap = None
    try:
        info = pltpu.get_tpu_info()
        cap = int(getattr(info, "vmem_capacity_bytes", 0)) or None
    except Exception:
        cap = None
    if cap is not None and cap >= 96 * 1024 * 1024:
        # v5e / v6e: 128 MiB physical VMEM -> big tiles, generous scoped limit.
        return 8 * 1024 * 1024, 96 * 1024 * 1024
    # v7x (64 MiB physical) or unknown backend: stay conservative.
    return 2 * 1024 * 1024, 40 * 1024 * 1024


def _select_tile(btz, c, block_cap_bytes):
    """Pick the row-tile size.  Budget uses 4 B/elem: the in-kernel f32 working set
    dominates VMEM pressure regardless of the input dtype."""
    tile_n = 512
    while tile_n > 8 and tile_n * c * 4 > block_cap_bytes:
        tile_n //= 2
    # TODO(synk): for very large C, chunk the class axis in-kernel (online softmax)
    # instead of shrinking tile_n all the way to 8.
    if btz <= tile_n:
        if btz >= 256:
            # Split into >=2 row tiles so both v7x TensorCores get work.
            tile_n = max(128, _round_up(_cdiv(btz, 2), 128))
        else:
            # Single tile spanning the full row extent (full-extent dims are exempt
            # from the multiple-of-8 block rule) -> no padding, no masking.
            tile_n = btz
    return tile_n


def _make_kernel(*, btz, tile_n, c, packed, shared_labels, needs_mask, lane_out):
    """Fused CE + symmetric-KL row-tile kernel, specialised for one input layout."""

    def _compute(yp1, yp2, yt1, yt2):
        # yp*: (TN, C) f32 ; yt*: (TN, 1) int32 (yt2 unused when shared_labels).
        tn, cc = yp1.shape
        cls = lax.broadcasted_iota(jnp.int32, (tn, cc), 1)

        # Stable log-softmax pieces for both halves (exp/log -> EUP slot).
        m1 = jnp.max(yp1, axis=-1, keepdims=True)
        e1 = jnp.exp(yp1 - m1)
        z1 = jnp.sum(e1, axis=-1, keepdims=True)
        m2 = jnp.max(yp2, axis=-1, keepdims=True)
        e2 = jnp.exp(yp2 - m2)
        z2 = jnp.sum(e2, axis=-1, keepdims=True)
        logz1 = m1 + jnp.log(z1)
        logz2 = m2 + jnp.log(z2)

        # Per-row reciprocal on the EUP instead of TN*C f32 divides on the VPU.
        inv_z1 = pl.reciprocal(z1, approx=True)
        inv_z2 = pl.reciprocal(z2, approx=True)

        # d = log_softmax(yp2) - log_softmax(yp1), without materialising ls1/ls2.
        d = (yp2 - yp1) - (logz2 - logz1)
        # Symmetric KL row sum: sum_c (s2 - s1) * (ls2 - ls1).
        kl = jnp.sum((e2 * inv_z2 - e1 * inv_z1) * d, axis=-1)          # (TN,)

        if shared_labels:
            # 3-arg form: one one-hot mask, fused gather of both halves.
            g = jnp.sum(jnp.where(cls == yt1, yp1 + yp2, 0.0), axis=-1)
            ce = (logz1[:, 0] + logz2[:, 0]) - g
        else:
            g1 = jnp.sum(jnp.where(cls == yt1, yp1, 0.0), axis=-1)
            g2 = jnp.sum(jnp.where(cls == yt2, yp2, 0.0), axis=-1)
            ce = (logz1[:, 0] - g1) + (logz2[:, 0] - g2)
        return ce, kl

    def _finalize(ce, kl, ce_ref, kl_ref):
        if lane_out:
            ce_o, kl_o = ce[None, :], kl[None, :]                       # (1, TN)
            if needs_mask:
                rows = (pl.program_id(0) * tile_n
                        + lax.broadcasted_iota(jnp.int32, (1, tile_n), 1))
                valid = rows < btz
                # select (not multiply): NaN/garbage in OOB tail rows cannot leak.
                ce_o = jnp.where(valid, ce_o, 0.0)
                kl_o = jnp.where(valid, kl_o, 0.0)
        else:
            ce_o, kl_o = ce[:, None], kl[:, None]                       # (TN, 1)
            if needs_mask:
                rows = (pl.program_id(0) * tile_n
                        + lax.broadcasted_iota(jnp.int32, (tile_n, 1), 0))
                valid = rows < btz
                ce_o = jnp.where(valid, ce_o, 0.0)
                kl_o = jnp.where(valid, kl_o, 0.0)
        ce_ref[...] = ce_o
        kl_ref[...] = kl_o

    if packed:
        # One interleaved-logits ref (TN, 2C) + packed labels (TN, 2): the single
        # contiguous DMA reads y_pred exactly once; halves split on the VMEM tile.
        def kernel(yp_ref, yt_ref, ce_ref, kl_ref):
            yp = yp_ref[...].astype(jnp.float32)
            yp2 = yp[:, :c]          # even rows of the original y_pred
            yp1 = yp[:, c:]          # odd rows
            yt = yt_ref[...]
            ce, kl = _compute(yp1, yp2, yt[:, 1:2], yt[:, 0:1])
            _finalize(ce, kl, ce_ref, kl_ref)
    elif shared_labels:
        def kernel(yp1_ref, yp2_ref, yt_ref, ce_ref, kl_ref):
            ce, kl = _compute(yp1_ref[...].astype(jnp.float32),
                              yp2_ref[...].astype(jnp.float32),
                              yt_ref[...], None)
            _finalize(ce, kl, ce_ref, kl_ref)
    else:
        def kernel(yp1_ref, yp2_ref, yt1_ref, yt2_ref, ce_ref, kl_ref):
            ce, kl = _compute(yp1_ref[...].astype(jnp.float32),
                              yp2_ref[...].astype(jnp.float32),
                              yt1_ref[...], yt2_ref[...])
            _finalize(ce, kl, ce_ref, kl_ref)

    return kernel


def _rdrop_core(logit_args, logit_spec_fns, label_args, label_spec_fns,
                btz, c, alpha, *, packed, shared_labels):
    block_cap, vmem_limit = _vmem_budget()
    tile_n = _select_tile(btz, c, block_cap)
    grid = _cdiv(btz, tile_n)
    n_out = grid * tile_n
    needs_mask = n_out != btz
    # Lane-dense per-row outputs whenever the block width is legal; otherwise
    # (tile_n < 128 with multiple tiles, i.e. huge C) fall back to a sublane layout.
    lane_out = (grid == 1) or (tile_n % 128 == 0)

    if lane_out:
        out_sd = jax.ShapeDtypeStruct((1, n_out), jnp.float32)
        out_spec = pl.BlockSpec((1, tile_n), lambda i: (0, i))
    else:
        out_sd = jax.ShapeDtypeStruct((n_out, 1), jnp.float32)
        out_spec = pl.BlockSpec((tile_n, 1), lambda i: (i, 0))

    kernel = _make_kernel(btz=btz, tile_n=tile_n, c=c, packed=packed,
                          shared_labels=shared_labels, needs_mask=needs_mask,
                          lane_out=lane_out)

    in_specs = ([fn(tile_n) for fn in logit_spec_fns]
                + [fn(tile_n) for fn in label_spec_fns])

    ce_arr, kl_arr = pl.pallas_call(
        kernel,
        out_shape=(out_sd, out_sd),
        grid_spec=pltpu.PrefetchScalarGridSpec(
            num_scalar_prefetch=0,
            grid=(grid,),
            in_specs=in_specs,
            out_specs=[out_spec, out_spec],
        ),
        compiler_params=pltpu.CompilerParams(
            dimension_semantics=("parallel",),
            vmem_limit_bytes=vmem_limit,
        ),
    )(*logit_args, *label_args)

    # Masked tail entries are exactly zero, so whole-array sums are correct.
    loss_sup = jnp.sum(ce_arr) / (2.0 * btz)      # CE mean over all 2*btz rows
    rdrop_mean = jnp.sum(kl_arr) / (btz * c)      # elementwise mean over [btz, C]
    return loss_sup + rdrop_mean / 4.0 * alpha


def rdrop_loss(*args, alpha=4, rank="adjacent"):
    """JAX/Pallas equivalent of RDropLoss.forward (2-arg or 3-arg form)."""
    assert len(args) in (2, 3), "RDropLoss only supports 2 or 3 input args"
    assert rank in ("adjacent", "updown")

    if len(args) == 2:
        y_pred, y_true = args
        n2, c = y_pred.shape
        assert n2 % 2 == 0, "2-arg form expects an even number of rows (btz*2)"
        btz = n2 // 2
        y_true = y_true.astype(jnp.int32)

        if rank == "adjacent":
            # Free bitcast reshapes; the BlockSpec DMA de-interleaves even/odd rows.
            yp_packed = y_pred.reshape(btz, 2 * c)       # cols [:c]=even, [c:]=odd
            yt_packed = y_true.reshape(btz, 2)
            return _rdrop_core(
                (yp_packed,),
                (lambda t: pl.BlockSpec((t, 2 * c), lambda i: (i, 0)),),
                (yt_packed,),
                (lambda t: pl.BlockSpec((t, 2), lambda i: (i, 0)),),
                btz, c, alpha, packed=True, shared_labels=False)

        # rank == 'updown': free reshape, same HBM buffer passed twice.
        yp3 = y_pred.reshape(2, btz, c)                  # [0]=first half, [1]=second
        yt1 = y_true[:btz].reshape(btz, 1)
        yt2 = y_true[btz:].reshape(btz, 1)
        return _rdrop_core(
            (yp3, yp3),
            (lambda t: pl.BlockSpec((None, t, c), lambda i: (0, i, 0)),
             lambda t: pl.BlockSpec((None, t, c), lambda i: (1, i, 0))),
            (yt1, yt2),
            (lambda t: pl.BlockSpec((t, 1), lambda i: (i, 0)),
             lambda t: pl.BlockSpec((t, 1), lambda i: (i, 0))),
            btz, c, alpha, packed=False, shared_labels=False)

    # 3-arg form: shared labels.
    y_pred1, y_pred2, y_true = args
    btz, c = y_pred1.shape
    yt = y_true.astype(jnp.int32).reshape(btz, 1)
    return _rdrop_core(
        (y_pred1, y_pred2),
        (lambda t: pl.BlockSpec((t, c), lambda i: (i, 0)),
         lambda t: pl.BlockSpec((t, c), lambda i: (i, 0))),
        (yt,),
        (lambda t: pl.BlockSpec((t, 1), lambda i: (i, 0)),),
        btz, c, alpha, packed=False, shared_labels=True)


def _reference_rdrop(*args, alpha=4, rank="adjacent"):
    """Pure-JAX port of the PyTorch forward for validation."""
    if len(args) == 2:
        y_pred, y_true = args
        logp = jax.nn.log_softmax(y_pred, axis=-1)
        loss_sup = -jnp.mean(
            jnp.take_along_axis(logp, y_true[:, None].astype(jnp.int32), axis=-1))
        if rank == "adjacent":
            y1, y2 = y_pred[1::2], y_pred[::2]
        else:
            h = y_true.shape[0] // 2
            y1, y2 = y_pred[:h], y_pred[h:]
    else:
        y1, y2, y_true = args
        lp1 = jax.nn.log_softmax(y1, -1)
        lp2 = jax.nn.log_softmax(y2, -1)
        idx = y_true[:, None].astype(jnp.int32)
        ce1 = -jnp.mean(jnp.take_along_axis(lp1, idx, axis=-1))
        ce2 = -jnp.mean(jnp.take_along_axis(lp2, idx, axis=-1))
        loss_sup = (ce1 + ce2) / 2.0
    ls1 = jax.nn.log_softmax(y1, -1)
    ls2 = jax.nn.log_softmax(y2, -1)
    s1, s2 = jnp.exp(ls1), jnp.exp(ls2)
    kl = s2 * (ls2 - ls1) + s1 * (ls1 - ls2)
    return loss_sup + jnp.mean(kl) / 4.0 * alpha


if __name__ == "__main__":
    # Tolerance note: pl.reciprocal(approx=True) is used for the per-row softmax
    # normaliser, so compare at 2e-3 instead of 1e-4.
    TOL = dict(atol=2e-3, rtol=2e-3)

    key = jax.random.PRNGKey(0)
    k1, k2 = jax.random.split(key)

    # 2-arg form, rank='adjacent': y_pred [btz*2, num_labels], y_true [btz*2]
    btz2, num_labels = 16, 32
    y_pred = jax.random.normal(k1, (btz2, num_labels), dtype=jnp.float32)
    y_true = jax.random.randint(k2, (btz2,), 0, num_labels, dtype=jnp.int32)
    loss = jax.block_until_ready(rdrop_loss(y_pred, y_true, alpha=4, rank="adjacent"))
    ref = _reference_rdrop(y_pred, y_true, alpha=4, rank="adjacent")
    assert jnp.allclose(loss, ref, **TOL), (loss, ref)

    # 2-arg form, rank='updown'
    loss_u = jax.block_until_ready(rdrop_loss(y_pred, y_true, alpha=4, rank="updown"))
    ref_u = _reference_rdrop(y_pred, y_true, alpha=4, rank="updown")
    assert jnp.allclose(loss_u, ref_u, **TOL), (loss_u, ref_u)

    # 3-arg form: y_pred1/y_pred2 [btz, num_labels], y_true [btz]
    y1 = jax.random.normal(jax.random.PRNGKey(1), (8, num_labels), dtype=jnp.float32)
    y2 = jax.random.normal(jax.random.PRNGKey(2), (8, num_labels), dtype=jnp.float32)
    yt = jax.random.randint(jax.random.PRNGKey(3), (8,), 0, num_labels, dtype=jnp.int32)
    loss3 = jax.block_until_ready(rdrop_loss(y1, y2, yt, alpha=4))
    ref3 = _reference_rdrop(y1, y2, yt, alpha=4)
    assert jnp.allclose(loss3, ref3, **TOL), (loss3, ref3)

    # Larger adjacent case exercising the multi-tile + masked-tail (unpadded) path.
    ym = jax.random.normal(jax.random.PRNGKey(4), (600, 128), dtype=jnp.float32)
    ytm = jax.random.randint(jax.random.PRNGKey(5), (600,), 0, 128, dtype=jnp.int32)
    loss_m = jax.block_until_ready(rdrop_loss(ym, ytm, alpha=4, rank="adjacent"))
    ref_m = _reference_rdrop(ym, ytm, alpha=4, rank="adjacent")
    assert jnp.allclose(loss_m, ref_m, **TOL), (loss_m, ref_m)

    print("KERNEL_OK")
</pallas_src>

<mosaic_0001>
module attributes {stable_mosaic.version = 11 : i64} {
  func.func @kernel(%arg0: i32, %arg1: memref<8x64xf32, #tpu.memory_space<vmem>>, %arg2: memref<8x2xi32, #tpu.memory_space<vmem>>, %arg3: memref<1x8xf32, #tpu.memory_space<vmem>>, %arg4: memref<1x8xf32, #tpu.memory_space<vmem>>) attributes {dimension_semantics = [#tpu.dimension_semantics<parallel>], iteration_bounds = array<i64: 1>, scalar_prefetch = 0 : i64, scratch_operands = 0 : i64, tpu.core_type = #tpu.core_type<tc>, window_params = [{transform_indices = @transform_0, window_bounds = array<i64: 8, 64>}, {transform_indices = @transform_1, window_bounds = array<i64: 8, 2>}, {transform_indices = @transform_2, window_bounds = array<i64: 1, 8>}, {transform_indices = @transform_3, window_bounds = array<i64: 1, 8>}]} {
    %c0 = arith.constant 0 : index
    %c0_0 = arith.constant 0 : index
    %0 = vector.load %arg1[%c0, %c0_0] : memref<8x64xf32, #tpu.memory_space<vmem>>, vector<8x64xf32>
    %1 = vector.extract_strided_slice %0 {offsets = [0, 0], sizes = [8, 32], strides = [1, 1]} : vector<8x64xf32> to vector<8x32xf32>
    %2 = vector.extract_strided_slice %0 {offsets = [0, 32], sizes = [8, 32], strides = [1, 1]} : vector<8x64xf32> to vector<8x32xf32>
    %c0_1 = arith.constant 0 : index
    %c0_2 = arith.constant 0 : index
    %3 = vector.load %arg2[%c0_1, %c0_2] : memref<8x2xi32, #tpu.memory_space<vmem>>, vector<8x2xi32>
    %4 = vector.extract_strided_slice %3 {offsets = [0, 1], sizes = [8, 1], strides = [1, 1]} : vector<8x2xi32> to vector<8x1xi32>
    %5 = vector.extract_strided_slice %3 {offsets = [0, 0], sizes = [8, 1], strides = [1, 1]} : vector<8x2xi32> to vector<8x1xi32>
    %6 = tpu.iota {dimensions = array<i32: 1>} : vector<8x32xi32>
    %cst = arith.constant dense<0xFF800000> : vector<8xf32>
    %7 = vector.multi_reduction <maximumf>, %2, %cst [1] : vector<8x32xf32> to vector<8xf32>
    %8 = vector.shape_cast %7 : vector<8xf32> to vector<8x1xf32>
    %9 = vector.broadcast %8 : vector<8x1xf32> to vector<8x32xf32>
    %10 = arith.subf %2, %9 : vector<8x32xf32>
    %11 = math.exp %10 : vector<8x32xf32>
    %cst_3 = arith.constant dense<0.000000e+00> : vector<8xf32>
    %12 = vector.multi_reduction <add>, %11, %cst_3 [1] : vector<8x32xf32> to vector<8xf32>
    %13 = vector.shape_cast %12 : vector<8xf32> to vector<8x1xf32>
    %cst_4 = arith.constant dense<0xFF800000> : vector<8xf32>
    %14 = vector.multi_reduction <maximumf>, %1, %cst_4 [1] : vector<8x32xf32> to vector<8xf32>
    %15 = vector.shape_cast %14 : vector<8xf32> to vector<8x1xf32>
    %16 = vector.broadcast %15 : vector<8x1xf32> to vector<8x32xf32>
    %17 = arith.subf %1, %16 : vector<8x32xf32>
    %18 = math.exp %17 : vector<8x32xf32>
    %cst_5 = arith.constant dense<0.000000e+00> : vector<8xf32>
    %19 = vector.multi_reduction <add>, %18, %cst_5 [1] : vector<8x32xf32> to vector<8xf32>
    %20 = vector.shape_cast %19 : vector<8xf32> to vector<8x1xf32>
    %21 = math.log %13 : vector<8x1xf32>
    %22 = arith.addf %8, %21 : vector<8x1xf32>
    %23 = math.log %20 : vector<8x1xf32>
    %24 = arith.addf %15, %23 : vector<8x1xf32>
    %25 = tpu.reciprocal %13 {approx = true} : vector<8x1xf32> -> vector<8x1xf32>
    %26 = tpu.reciprocal %20 {approx = true} : vector<8x1xf32> -> vector<8x1xf32>
    %27 = arith.subf %1, %2 : vector<8x32xf32>
    %28 = arith.subf %24, %22 : vector<8x1xf32>
    %29 = vector.broadcast %28 : vector<8x1xf32> to vector<8x32xf32>
    %30 = arith.subf %27, %29 : vector<8x32xf32>
    %31 = vector.broadcast %26 : vector<8x1xf32> to vector<8x32xf32>
    %32 = arith.mulf %18, %31 : vector<8x32xf32>
    %33 = vector.broadcast %25 : vector<8x1xf32> to vector<8x32xf32>
    %34 = arith.mulf %11, %33 : vector<8x32xf32>
    %35 = arith.subf %32, %34 : vector<8x32xf32>
    %36 = arith.mulf %35, %30 : vector<8x32xf32>
    %cst_6 = arith.constant dense<0.000000e+00> : vector<8xf32>
    %37 = vector.multi_reduction <add>, %36, %cst_6 [1] : vector<8x32xf32> to vector<8xf32>
    %38 = vector.broadcast %4 : vector<8x1xi32> to vector<8x32xi32>
    %39 = arith.cmpi eq, %6, %38 : vector<8x32xi32>
    %cst_7 = arith.constant 0.000000e+00 : f32
    %40 = vector.broadcast %cst_7 : f32 to vector<8x32xf32>
    %41 = arith.select %39, %2, %40 : vector<8x32xi1>, vector<8x32xf32>
    %cst_8 = arith.constant dense<0.000000e+00> : vector<8xf32>
    %42 = vector.multi_reduction <add>, %41, %cst_8 [1] : vector<8x32xf32> to vector<8xf32>
    %43 = vector.broadcast %5 : vector<8x1xi32> to vector<8x32xi32>
    %44 = arith.cmpi eq, %6, %43 : vector<8x32xi32>
    %cst_9 = arith.constant 0.000000e+00 : f32
    %45 = vector.broadcast %cst_9 : f32 to vector<8x32xf32>
    %46 = arith.select %44, %1, %45 : vector<8x32xi1>, vector<8x32xf32>
    %cst_10 = arith.constant dense<0.000000e+00> : vector<8xf32>
    %47 = vector.multi_reduction <add>, %46, %cst_10 [1] : vector<8x32xf32> to vector<8xf32>
    %48 = vector.shape_cast %22 : vector<8x1xf32> to vector<8xf32>
    %49 = arith.subf %48, %42 : vector<8xf32>
    %50 = vector.shape_cast %24 : vector<8x1xf32> to vector<8xf32>
    %51 = arith.subf %50, %47 : vector<8xf32>
    %52 = arith.addf %49, %51 : vector<8xf32>
    %53 = vector.shape_cast %52 : vector<8xf32> to vector<1x8xf32>
    %54 = vector.shape_cast %37 : vector<8xf32> to vector<1x8xf32>
    %c0_11 = arith.constant 0 : index
    %c0_12 = arith.constant 0 : index
    %55 = vector.load %arg3[%c0_11, %c0_12] : memref<1x8xf32, #tpu.memory_space<vmem>>, vector<1x8xf32>
    tpu.vector_store %arg3[%c0_11, %c0_12], %53 {strides = array<i32>} : memref<1x8xf32, #tpu.memory_space<vmem>>, vector<1x8xf32>,
    %c0_13 = arith.constant 0 : index
    %c0_14 = arith.constant 0 : index
    %56 = vector.load %arg4[%c0_13, %c0_14] : memref<1x8xf32, #tpu.memory_space<vmem>>, vector<1x8xf32>
    tpu.vector_store %arg4[%c0_13, %c0_14], %54 {strides = array<i32>} : memref<1x8xf32, #tpu.memory_space<vmem>>, vector<1x8xf32>,
    return
  }
  func.func @transform_0(%arg0: i32) -> (i32, i32) {
    %c0_i32 = arith.constant 0 : i32
    %c0_i32_0 = arith.constant 0 : i32
    return %arg0, %c0_i32 : i32, i32
  }
  func.func @transform_1(%arg0: i32) -> (i32, i32) {
    %c0_i32 = arith.constant 0 : i32
    %c0_i32_0 = arith.constant 0 : i32
    return %arg0, %c0_i32 : i32, i32
  }
  func.func @transform_2(%arg0: i32) -> (i32, i32) {
    %c0_i32 = arith.constant 0 : i32
    %c0_i32_0 = arith.constant 0 : i32
    return %c0_i32, %arg0 : i32, i32
  }
  func.func @transform_3(%arg0: i32) -> (i32, i32) {
    %c0_i32 = arith.constant 0 : i32
    %c0_i32_0 = arith.constant 0 : i32
    return %c0_i32, %arg0 : i32, i32
  }
}

</mosaic_0001>

<bundles_post_ra>
// kernel: tpu_custom_call.1
= control target key start
LH: loop header
LB: loop body
LE: loop exit
PB: predicated region body
PF: predicated region fallthrough
CT: control target
= control target key end

     0   :  { %9 = vsyncpa [#allocation3], 0  ;;  %vm19_vm0 = vcmask 523520   ;;  %vm30_vm1 = vcmask 261120   ;;  %s270_s0 = inlined_call_operand.vmem [shape: f32[8,64], index: 0, kind: input, shape index: {}]   ;;  %s271_s1 = inlined_call_operand.vmem [shape: s32[8,2], index: 1, kind: input, shape index: {}]   ;;  %s272_s2 = inlined_call_operand.hbm [shape: f32[1,8], index: 2, kind: output, shape index: {0}]   ;;  %s273_s3 = inlined_call_operand.hbm [shape: f32[1,8], index: 3, kind: output, shape index: {1}]  }
   0x1   :  { %v226_v0 = vld [vmem:[%s270_s0] sm:$0xff] }
   0x2   :  { %10 = vsyncpa [#allocation5], 0  ;;  %v20_v1 = vsel %vm19_vm0, %v226_v0, -inf  ;;  %v34_v2 = vsel %vm30_vm1, %v226_v0, -inf  ;;  %v198_v6 = vmov 1   ;;  %s199_s0 = smov 96   ;;  %v17_v18 = vlaneseq }
   0x3   :  { %21 = vmax.xlane.f32.xlu0 %v20_v1  ;;  %35 = vmax.xlane.f32.xlu1 %v34_v2  ;;  %v16_v8 = vld [vmem:[%s271_s1] sm:$0xff]  ;;  %v200_v9 = vmov 0   ;;  %s201_s1 = smov [#allocation2]   ;;  %vm94_vm4 = vcmask 57344  }
   0x4   :  { %136 = vset.pattern.permute.xlu1 %v198_v6  ;;  %137 = vset.pattern.permute.xlu0 %v200_v9  ;;  %v18_v20 = vand.u32 127, %v17_v18  ;;  %v90_v45 = vshrl.u32 %v17_v18, 7  ;;  %s109_s16 = sshll.u32 %s201_s1, 4  ;;  %s110_s16 = int_to_ptr.vmem [resolvable:$true] %s109_s16 }
   0x5   :  { %s150_s17 = scalar_lea.vmem %s110_s16, 16  ;;  %s154_s18 = scalar_lea.vmem %s110_s16, 32 }
   0x6   :  { %v91_v50 = vsub.s32 %v18_v20, %v90_v45  ;;  %p151_p0 = scmp.ne.s32.totalorder %s110_s16, %s150_s17  ;;  %p155_p1 = scmp.lt.s32.totalorder %s110_s16, %s110_s16 }
   0x7   :  { %p156_p2 = scmp.lt.s32.totalorder %s154_s18, %s150_s17 }
   0x9   :  { %p157_p3 = por %p156_p2, %p155_p1 }
   0xb   :  { %p158_p4 = pnand %p157_p3, %p151_p0 }
  0x90   :  { %v22_v3 = vpop.xlane.xlu0 %21  ;;  %v36_v10 = vpop.xlane.xlu1 %35 }
  0x91   :  { %v23_v4 = vsub.f32 %v226_v0, %v22_v3  ;;  %v37_v11 = vsub.f32 %v226_v0, %v36_v10 }
  0x93   :  { %v24_v5 = vmul.f32 1.442695, %v23_v4  ;;  %v38_v12 = vmul.f32 1.442695, %v37_v11 }
  0x95   :  { %138 = vpow2.f32 %v24_v5 }
  0x96   :  { %140 = vpow2.f32 %v38_v12 }
  0x9f   :  { %v139_v7 = vpop.eup %138 }
  0xa0   :  { %27 = vrot.lane.b32.xlu0 %v139_v7, %s199_s0  ;;  %v141_v13 = vpop.eup %140 }
  0xa1   :  { %v40_v16 = vsel %vm30_vm1, %v141_v13, 0.0 }
  0xa4   :  { %78 = vperm.xlu0 %137, %v16_v8  }
 0x112   :  { %v28_v14 = vpop.permute.xlu0 %27 }
 0x113   :  { %v31_v15 = vsel %vm30_vm1, %v28_v14, 0.0 }
 0x114   :  { %32 = vadd.xlane.f32.xlu1 %v31_v15 }
 0x118   :  { %41 = vadd.xlane.f32.xlu1 %v40_v16 }
 0x123   :  { %v79_v27 = vpop.permute.xlu0 %78 }
 0x124   :  { %vm80_vm3 = vcmp.eq.s32.totalorder %v18_v20, %v79_v27 }
 0x125   :  { %v81_v28 = vsel %vm80_vm3, %v226_v0, 0.0 }
 0x126   :  { %v82_v29 = vsel %vm30_vm1, %v81_v28, 0.0 }
 0x129   :  { %70 = vperm.xlu1 %136, %v16_v8  }
 0x12d   :  { %52 = vrot.lane.b32.xlu1 %v226_v0, %s199_s0 }
 0x1a1   :  { %v33_v17 = vpop.xlane.xlu1 %32 }
 0x1a2   :  { %142 = vrcp.f32 %v33_v17 }
 0x1a5   :  { %v42_v19 = vpop.xlane.xlu1 %41 }
 0x1a6   :  { %144 = vlog2.f32 %v42_v19 }
 0x1a7   :  { %146 = vlog2.f32 %v33_v17 }
 0x1a8   :  { %148 = vrcp.f32 %v42_v19 }
 0x1a9   :  { %v71_v21 = vpop.permute.xlu1 %70 }
 0x1aa   :  { %vm72_vm2 = vcmp.eq.s32.totalorder %v18_v20, %v71_v21 }
 0x1ac   :  { %v143_v22 = vpop.eup %142 }
 0x1ad   :  { %v53_v23 = vpop.permute.xlu1 %52  ;;  %v59_v24 = vmul.f32 %v143_v22, %v139_v7 }
 0x1ae   :  { %v73_v25 = vsel %vm72_vm2, %v53_v23, 0.0  ;;  %v55_v38 = vsub.f32 %v226_v0, %v53_v23 }
 0x1af   :  { %v74_v26 = vsel %vm30_vm1, %v73_v25, 0.0  ;;  %61 = vrot.lane.b32.xlu1 %v59_v24, %s199_s0 }
 0x1b0   :  { %75 = vadd.xlane.f32.xlu0 %v74_v26  ;;  %v145_v30 = vpop.eup %144 }
 0x1b1   :  { %v147_v31 = vpop.eup %146  ;;  %v47_v32 = vmul.f32 0.6931472, %v145_v30 }
 0x1b2   :  { %v44_v33 = vmul.f32 0.6931472, %v147_v31  ;;  %v149_v36 = vpop.eup %148 }
 0x1b3   :  { %v48_v34 = vadd.f32 %v47_v32, %v36_v10  ;;  %v58_v39 = vmul.f32 %v149_v36, %v141_v13 }
 0x1b4   :  { %v45_v35 = vadd.f32 %v44_v33, %v22_v3 }
 0x1b6   :  { %v56_v37 = vsub.f32 %v48_v34, %v45_v35 }
 0x1b8   :  { %v57_v41 = vsub.f32 %v55_v38, %v56_v37 }
 0x1d3   :  { %83 = vadd.xlane.f32.xlu1 %v82_v29 }
 0x221   :  { %v62_v40 = vpop.permute.xlu1 %61 }
 0x222   :  { %v64_v42 = vsub.f32 %v58_v39, %v62_v40 }
 0x224   :  { %v65_v43 = vmul.f32 %v64_v42, %v57_v41 }
 0x226   :  { %v66_v44 = vsel %vm30_vm1, %v65_v43, 0.0 }
 0x227   :  { %67 = vadd.xlane.f32.xlu0 %v66_v44 }
 0x23d   :  { %v76_v46 = vpop.xlane.xlu0 %75 }
 0x23e   :  { %v85_v48 = vsub.f32 %v45_v35, %v76_v46 }
 0x260   :  { %v84_v47 = vpop.xlane.xlu1 %83 }
 0x261   :  { %v86_v49 = vsub.f32 %v48_v34, %v84_v47 }
 0x263   :  { %v87_v51 = vadd.f32 %v86_v49, %v85_v48 }
 0x265   :  { %v92_v52 = vrot.slane %v87_v51, %v91_v50 }
 0x267   :  { %95 = vst.msk [vmem:[#allocation2] sm:$0x1] %vm94_vm4, %v92_v52 }
 0x268   :  { %161 = shalt.err (!%p158_p4)
}
 0x269   :  { %s162_s21 = scalar_lea.hbm %s272_s2, 16 }
 0x26a   :  { %p163_p5 = scmp.ne.s32.totalorder %s272_s2, %s162_s21  ;;  %p166_p6 = scmp.lt.u32.totalorder %s162_s21, %s272_s2 }
 0x26c   :  { %p168_p7 = pnand %p166_p6, %p163_p5 }
 0x26e   :  { %171 = shalt.err (!%p168_p7)
}
 0x26f   :  { %112 = dma.vmem_to_hbm [thread:$0]  %s110_s16, 16, %s272_s2, [#allocation3]  }
 0x270   :  { %s202_s28 = smov [#allocation4]  }
 0x271   :  { %s119_s29 = sshll.u32 %s202_s28, 4  ;;  %s120_s29 = int_to_ptr.vmem [resolvable:$true] %s119_s29 }
 0x272   :  { %s172_s30 = scalar_lea.vmem %s120_s29, 16  ;;  %s176_s4 = scalar_lea.vmem %s120_s29, 32 }
 0x273   :  { %p173_p8 = scmp.ne.s32.totalorder %s120_s29, %s172_s30  ;;  %p177_p9 = scmp.lt.s32.totalorder %s120_s29, %s120_s29 }
 0x274   :  { %p178_p10 = scmp.lt.s32.totalorder %s176_s4, %s172_s30 }
 0x276   :  { %p179_p11 = por %p178_p10, %p177_p9 }
 0x278   :  { %p180_p12 = pnand %p179_p11, %p173_p8 }
 0x2b4   :  { %v68_v53 = vpop.xlane.xlu0 %67 }
 0x2b5   :  { %v100_v54 = vrot.slane %v68_v53, %v91_v50 }
 0x2b7   :  { %102 = vst.msk [vmem:[#allocation4] sm:$0x1] %vm94_vm4, %v100_v54 }
 0x2b8   :  { %183 = shalt.err (!%p180_p12)
}
 0x2b9   :  { %s184_s7 = scalar_lea.hbm %s273_s3, 16 }
 0x2ba   :  { %p185_p13 = scmp.ne.s32.totalorder %s273_s3, %s184_s7  ;;  %p188_p0 = scmp.lt.u32.totalorder %s184_s7, %s273_s3 }
 0x2bc   :  { %p190_p1 = pnand %p188_p0, %p185_p13 }
 0x2be   :  { %193 = shalt.err (!%p190_p1)
}
 0x2bf   :  { %122 = dma.vmem_to_hbm [thread:$0]  %s120_s29, 16, %s273_s3, [#allocation5]  }
 0x2c0   :  { %194 = dma.done.wait [#allocation3], 16  }
 0x2c1   :  { %195 = vsyncadd [#allocation3], 4294967280 }
 0x2c2   :  { %196 = dma.done.wait [#allocation5], 16  }
 0x2c3   :  { %197 = vsyncadd [#allocation5], 4294967280 }
 0x2c4   :  { %129 = vsyncpa [#allocation3], 1 }
 0x2c5   :  { %130 = vsyncpa [#allocation5], 1 }

</bundles_post_ra>
